<compile_context>
chip_gen: v7x
topology: tpu7x:2x2x1
jax: 0.10.0
libtpu: 0.0.40
codegen_flags: <defaults>
</compile_context>

<pallas_src>
import functools

import jax
import jax.numpy as jnp
from jax.experimental import pallas as pl
from jax.experimental.pallas import tpu as pltpu

_LANE = 128
# 1024 rows x 128 lanes x 4 B = 512 KiB per f32 buffer; double-buffered
# in + out is ~2 MiB -> comfortably inside v5e's 16 MiB scoped-VMEM default
# while leaving plenty of grid steps for v7x's two TensorCores.
_MAX_TILE_ROWS = 1024  # multiple of 8 (f32) and 16 (bf16) sublane packing


def _fq_kernel(params_ref, x_ref, o_ref):
    """Elementwise fake-quantize of one (tile_rows, 128) tile.

    params_ref (SMEM, f32[5]): [inv_scale, scale, zero_point, qmin, qmax]
    """
    inv_scale = params_ref[0]
    scale = params_ref[1]
    zero_point = params_ref[2]
    qmin = params_ref[3]
    qmax = params_ref[4]

    x = x_ref[...].astype(jnp.float32)
    # q_x = clamp(round(x / scale + zero_point), qmin, qmax)
    # (divide replaced by multiply with precomputed 1/scale; jnp.round matches
    #  torch.round's round-half-to-even)
    q_x = jnp.clip(jnp.round(x * inv_scale + zero_point), qmin, qmax)
    # fq_x = (q_x - zero_point) * scale
    o_ref[...] = ((q_x - zero_point) * scale).astype(o_ref.dtype)


@jax.jit
def fixed_point_fake_quantize(x, bits, min_val, max_val):
    """JAX/Pallas port of FixedPointFakeQuantize.forward.

    x:        any-shaped float tensor (NCHW conv activations in the tests).
    bits:     scalar f32 (the nn.Parameter `bits`).
    min_val:  scalar f32 (observer.min_val).
    max_val:  scalar f32 (observer.max_val).
    """
    orig_shape = x.shape
    orig_dtype = x.dtype

    # --- scalar parameter setup (plain-JAX glue, mirrors the torch scalars) ---
    bits = jnp.asarray(bits, jnp.float32)
    min_val = jnp.asarray(min_val, jnp.float32)
    max_val = jnp.asarray(max_val, jnp.float32)

    b_int = jnp.clip(jnp.round(bits), 1.0, 32.0)           # clamp(round(bits),1,32)
    qmin = jnp.float32(0.0)
    qmax = jnp.exp2(b_int) - 1.0                            # 2**b_int - 1
    scale = (max_val - min_val) / (qmax - qmin)
    inv_scale = 1.0 / scale
    # zero_point uses the exact torch formula (scalar divide, costs nothing).
    zero_point = qmin - jnp.round(min_val / scale)
    # TODO(synk): torch has the same scale==0 hazard for degenerate observer
    # ranges (min_val == max_val); not guarded here to preserve semantics.
    params = jnp.stack([inv_scale, scale, zero_point, qmin, qmax]).astype(jnp.float32)

    # --- lane-dense (rows, 128) view with no full-tensor pad/slice copies ---
    n = x.size  # static under jit
    flat = x.reshape(-1)
    rem = n % _LANE
    if rem != 0:
        # Rare path (only when numel isn't a multiple of 128): pad just the
        # sub-128 tail so the last dim is lane-dense.
        flat = jnp.pad(flat, (0, _LANE - rem))
    rows = flat.shape[0] // _LANE
    x2d = flat.reshape(rows, _LANE)

    if rows <= _MAX_TILE_ROWS:
        tile_rows = rows          # single full-extent block (no 8-row constraint)
    else:
        tile_rows = _MAX_TILE_ROWS
    grid = (pl.cdiv(rows, tile_rows),)   # ragged last block handled by Pallas

    out2d = pl.pallas_call(
        _fq_kernel,
        out_shape=jax.ShapeDtypeStruct((rows, _LANE), orig_dtype),
        grid=grid,
        in_specs=[
            pl.BlockSpec(memory_space=pltpu.MemorySpace.SMEM),       # params
            pl.BlockSpec((tile_rows, _LANE), lambda i: (i, 0)),      # x tile
        ],
        out_specs=pl.BlockSpec((tile_rows, _LANE), lambda i: (i, 0)),
        compiler_params=pltpu.CompilerParams(
            dimension_semantics=("parallel",)),
    )(params, x2d)

    out_flat = out2d.reshape(-1)
    if rem != 0:
        out_flat = out_flat[:n]
    return out_flat.reshape(orig_shape)


def _reference(x, bits, min_val, max_val):
    """Pure-JAX reference using the same math as the kernel.

    Identical to the PyTorch forward except that `x / scale` is computed as
    `x * (1/scale)`, which can differ only at exact round-half boundaries.
    """
    b_int = jnp.clip(jnp.round(bits), 1.0, 32.0)
    qmin = jnp.float32(0.0)
    qmax = jnp.exp2(b_int) - 1.0
    scale = (max_val - min_val) / (qmax - qmin)
    inv_scale = 1.0 / scale
    zero_point = qmin - jnp.round(min_val / scale)
    q_x = jnp.clip(jnp.round(x.astype(jnp.float32) * inv_scale + zero_point),
                   qmin, qmax)
    return (q_x - zero_point) * scale


if __name__ == "__main__":
    key = jax.random.PRNGKey(0)

    # Small NCHW conv-activation-like input, consistent with the module's use.
    N, C, H, W = 2, 4, 16, 16
    x = jax.random.normal(key, (N, C, H, W), dtype=jnp.float32) * 3.0 - 0.5

    # Deterministic "module parameters": bits=8, observer min/max from the data
    # (what an observer would have recorded).
    bits = jnp.float32(8.0)
    min_val = jnp.min(x)
    max_val = jnp.max(x)

    out = fixed_point_fake_quantize(x, bits, min_val, max_val)
    out = jax.block_until_ready(out)

    ref = _reference(x, bits, min_val, max_val)
    assert out.shape == x.shape and out.dtype == x.dtype
    assert jnp.allclose(out.astype(jnp.float32), ref, atol=1e-5, rtol=1e-5), (
        float(jnp.max(jnp.abs(out.astype(jnp.float32) - ref))))

    print("KERNEL_OK")
</pallas_src>

<mosaic_0001>
module attributes {stable_mosaic.version = 11 : i64} {
  func.func @_fq_kernel(%arg0: i32, %arg1: memref<5xf32, #tpu.memory_space<smem>>, %arg2: memref<16x128xf32, #tpu.memory_space<vmem>>, %arg3: memref<16x128xf32, #tpu.memory_space<vmem>>) attributes {dimension_semantics = [#tpu.dimension_semantics<parallel>], iteration_bounds = array<i64: 1>, scalar_prefetch = 0 : i64, scratch_operands = 0 : i64, tpu.core_type = #tpu.core_type<tc>, window_params = [{transform_indices = @transform_0, window_bounds = array<i64: 5>}, {transform_indices = @transform_1, window_bounds = array<i64: 16, 128>}, {transform_indices = @transform_2, window_bounds = array<i64: 16, 128>}]} {
    %c0 = arith.constant 0 : index
    %0 = memref.load %arg1[%c0] : memref<5xf32, #tpu.memory_space<smem>>
    %c1 = arith.constant 1 : index
    %1 = memref.load %arg1[%c1] : memref<5xf32, #tpu.memory_space<smem>>
    %c2 = arith.constant 2 : index
    %2 = memref.load %arg1[%c2] : memref<5xf32, #tpu.memory_space<smem>>
    %c3 = arith.constant 3 : index
    %3 = memref.load %arg1[%c3] : memref<5xf32, #tpu.memory_space<smem>>
    %c4 = arith.constant 4 : index
    %4 = memref.load %arg1[%c4] : memref<5xf32, #tpu.memory_space<smem>>
    %c0_0 = arith.constant 0 : index
    %c0_1 = arith.constant 0 : index
    %5 = vector.load %arg2[%c0_0, %c0_1] : memref<16x128xf32, #tpu.memory_space<vmem>>, vector<16x128xf32>
    %6 = vector.broadcast %0 : f32 to vector<16x128xf32>
    %7 = arith.mulf %5, %6 : vector<16x128xf32>
    %8 = vector.broadcast %2 : f32 to vector<16x128xf32>
    %9 = arith.addf %7, %8 : vector<16x128xf32>
    %10 = math.roundeven %9 : vector<16x128xf32>
    %11 = vector.broadcast %3 : f32 to vector<16x128xf32>
    %12 = arith.maximumf %11, %10 : vector<16x128xf32>
    %13 = vector.broadcast %4 : f32 to vector<16x128xf32>
    %14 = arith.minimumf %13, %12 : vector<16x128xf32>
    %15 = vector.broadcast %2 : f32 to vector<16x128xf32>
    %16 = arith.subf %14, %15 : vector<16x128xf32>
    %17 = vector.broadcast %1 : f32 to vector<16x128xf32>
    %18 = arith.mulf %16, %17 : vector<16x128xf32>
    %c0_2 = arith.constant 0 : index
    %c0_3 = arith.constant 0 : index
    %19 = vector.load %arg3[%c0_2, %c0_3] : memref<16x128xf32, #tpu.memory_space<vmem>>, vector<16x128xf32>
    tpu.vector_store %arg3[%c0_2, %c0_3], %18 {strides = array<i32>} : memref<16x128xf32, #tpu.memory_space<vmem>>, vector<16x128xf32>,
    return
  }
  func.func @transform_0(%arg0: i32) -> i32 {
    %c0_i32 = arith.constant 0 : i32
    %c0_i32_0 = arith.constant 0 : i32
    return %c0_i32 : i32
  }
  func.func @transform_1(%arg0: i32) -> (i32, i32) {
    %c0_i32 = arith.constant 0 : i32
    %c0_i32_0 = arith.constant 0 : i32
    return %arg0, %c0_i32 : i32, i32
  }
  func.func @transform_2(%arg0: i32) -> (i32, i32) {
    %c0_i32 = arith.constant 0 : i32
    %c0_i32_0 = arith.constant 0 : i32
    return %arg0, %c0_i32 : i32, i32
  }
}

</mosaic_0001>

<bundles_post_ra>
// kernel: fixed_point_fake_quantize.1
= control target key start
LH: loop header
LB: loop body
LE: loop exit
PB: predicated region body
PF: predicated region fallthrough
CT: control target
= control target key end

     0   :  { %7 = vsyncpa [#allocation3], 0  ;;  %s109_s0 = inlined_call_operand.vmem [shape: f32[5], index: 0, kind: input, shape index: {}]   ;;  %s110_s1 = inlined_call_operand.vmem [shape: f32[16,128], index: 1, kind: input, shape index: {}]   ;;  %s111_s2 = inlined_call_operand.vmem [shape: f32[16,128], index: 2, kind: output, shape index: {}]  }
   0x1   :  { %s14_s11 = sshll.u32 %s109_s0, 4  ;;  %s15_s11 = int_to_ptr.vmem [resolvable:$true] %s14_s11 }
   0x2   :  { %s64_s12 = scalar_lea.vmem %s15_s11, 16  ;;  %p69_p1 = scmp.lt.s32.totalorder %s15_s11, %s15_s11 }
   0x3   :  { %p65_p0 = scmp.ne.s32.totalorder %s15_s11, %s64_s12  ;;  %p70_p2 = scmp.lt.s32.totalorder %s64_s12, %s64_s12 }
   0x5   :  { %p71_p3 = por %p70_p2, %p69_p1 }
   0x7   :  { %p72_p4 = pnand %p71_p3, %p65_p0 }
   0x9   :  { %75 = shalt.err (!%p72_p4)
}
   0xa   :  { %s78_s13 = smov [#allocation2]  }
   0xb   :  { %17 = dma.vmem_to_smem %s15_s11, 16, %s78_s13, [#allocation3]  }
   0xc   :  { %76 = dma.done.wait [#allocation3], 16  }
   0xd   :  { %77 = vsyncadd [#allocation3], 4294967280 }
   0xe   :  { %23 = sfence }
   0xf   :  { %s24_s14 = sld [smem:[#allocation2]]  ;;  %s58_s15 = sld [smem:[#allocation2 + $0x2]]  ;;  %v29_v0 = vld [vmem:[%s110_s1] sm:$0xff]  ;;  %v30_v1 = vld [vmem:[%s110_s1 + $0x8] sm:$0xff] }
  0x10   :  { %s59_s16 = sld [smem:[#allocation2 + $0x3]]  ;;  %s60_s17 = sld [smem:[#allocation2 + $0x4]] }
  0x11   :  { %s57_s21 = sld [smem:[#allocation2 + $0x1]] }
  0x15   :  { %v31_v2 = vstv %s24_s14  ;;  %v34_v4 = vstv %s58_s15 }
  0x16   :  { %v32_v3 = vmul.f32 %v31_v2, %v29_v0  ;;  %v33_v5 = vmul.f32 %v31_v2, %v30_v1  ;;  %v39_v8 = vstv %s59_s16  ;;  %v42_v11 = vstv %s60_s17 }
  0x17   :  { %v47_v16 = vstv %s57_s21 }
  0x18   :  { %v35_v6 = vadd.f32 %v34_v4, %v32_v3  ;;  %v36_v7 = vadd.f32 %v34_v4, %v33_v5 }
  0x1a   :  { %v61_v9 = vround.rtne.f32 %v35_v6  ;;  %v62_v10 = vround.rtne.f32 %v36_v7 }
  0x1c   :  { %v40_v12 = vmax.f32 %v39_v8, %v61_v9  ;;  %v41_v13 = vmax.f32 %v39_v8, %v62_v10 }
  0x1e   :  { %v43_v14 = vmin.f32 %v42_v11, %v40_v12  ;;  %v44_v15 = vmin.f32 %v42_v11, %v41_v13 }
  0x20   :  { %v45_v17 = vsub.f32 %v43_v14, %v34_v4  ;;  %v46_v18 = vsub.f32 %v44_v15, %v34_v4 }
  0x22   :  { %v48_v19 = vmul.f32 %v47_v16, %v45_v17  ;;  %v49_v20 = vmul.f32 %v47_v16, %v46_v18 }
  0x24   :  { %50 = vst [vmem:[%s111_s2] sm:$0xff] %v48_v19  ;;  %51 = vst [vmem:[%s111_s2 + $0x8] sm:$0xff] %v49_v20 }
  0x25   :  { %56 = vsyncpa [#allocation3], 1 }

</bundles_post_ra>
